<compile_context>
chip_gen: v5e
topology: v5e:2x2
jax: 0.10.0
libtpu: 0.0.40
codegen_flags: <defaults>
</compile_context>

<pallas_src>
import functools

import jax
import jax.numpy as jnp
from jax.experimental import pallas as pl
from jax.experimental.pallas import tpu as pltpu


def _round_up(x, m):
    return (x + m - 1) // m * m


def _rot_loss_kernel(data_ref, out_ref, *scratch, inv_n, num_tiles):
    tile = data_ref.shape[1]

    pred = data_ref[0:8, :]      # (8, T): [bin1_l0, bin1_l1, sin1, cos1,
                                 #          bin2_l0, bin2_l1, sin2, cos2]
    tgt = data_ref[8:16, :]      # (8, T): [tsin1, tcos1, tsin2, tcos2,
                                 #          bin1,  bin2,  mask,  valid]
    tsin1, tcos1 = tgt[0:1, :], tgt[1:2, :]
    tsin2, tcos2 = tgt[2:3, :], tgt[3:4, :]
    b1, b2 = tgt[4:5, :], tgt[5:6, :]
    m = tgt[6:7, :]
    valid = tgt[7:8, :]          # 1.0 for real columns, 0.0 for lane padding

    def softplus(x):
        # Numerically-stable log(1 + exp(x)).
        return jnp.maximum(x, 0.0) + jnp.log(1.0 + jnp.exp(-jnp.abs(x)))

    def ce_rows(l0, l1, tgt_bin):
        # 2-class CE with mask-scaled logits.  NOTE: rotbin targets are
        # strictly {0, 1}; the compare against 0.0 is exact for f32-packed
        # integer values.
        diff = (l1 - l0) * m
        x = jnp.where(tgt_bin == 0.0, diff, -diff)
        return softplus(x) * valid

    def smooth_l1(x, y):
        d = jnp.abs(x - y)
        return jnp.where(d < 1.0, 0.5 * d * d, d - 0.5)

    def res_rows(sin_p, cos_p, tsin, tcos, tgt_bin):
        v = jnp.where(tgt_bin != 0.0, valid, 0.0)
        return (smooth_l1(sin_p, tsin) + smooth_l1(cos_p, tcos)) * v, v

    ce = ce_rows(pred[0:1, :], pred[1:2, :], b1) + \
         ce_rows(pred[4:5, :], pred[5:6, :], b2)
    r1, v1 = res_rows(pred[2:3, :], pred[3:4, :], tsin1, tcos1, b1)
    r2, v2 = res_rows(pred[6:7, :], pred[7:8, :], tsin2, tcos2, b2)

    def finalize(ce_s, r1_s, v1_s, r2_s, v2_s):
        # Exact division: only two scalar divides in the epilogue.
        def safe_div(num, den):
            return jnp.where(den > 0.0, num / jnp.maximum(den, 1.0), 0.0)
        out_ref[...] = ce_s * inv_n + safe_div(r1_s, v1_s) + safe_div(r2_s, v2_s)

    if num_tiles == 1:
        # Common case: whole problem in one grid step — no accumulator, no
        # pl.when phases, reduce directly.
        s = lambda x: jnp.sum(x, axis=1, keepdims=True)     # (1, 1)
        finalize(s(ce), s(r1), s(v1), s(r2), s(v2))
    else:
        # Fallback for very large N: one full-tile accumulate per step (single
        # unmasked vector store, not five masked partial-sublane stores).
        (acc_ref,) = scratch
        i = pl.program_id(0)

        @pl.when(i == 0)
        def _():
            acc_ref[...] = jnp.zeros_like(acc_ref)

        pad = jnp.zeros((3, tile), jnp.float32)
        acc_ref[...] += jnp.concatenate([ce, r1, v1, r2, v2, pad], axis=0)

        @pl.when(i == num_tiles - 1)
        def _():
            sums = jnp.sum(acc_ref[...], axis=1, keepdims=True)   # (8, 1)
            finalize(sums[0:1, :], sums[1:2, :], sums[2:3, :],
                     sums[3:4, :], sums[4:5, :])


@jax.jit
def bin_rot_loss(output, mask, ind, rotbin, rotres):
    """output: (B, 8, H, W) f32, mask: (B, K), ind: (B, K) int,
    rotbin: (B, K, 2) int, rotres: (B, K, 2) f32  ->  scalar f32 loss."""
    B, C, H, W = output.shape
    assert C == 8, "BinRotLoss expects 8 prediction channels"
    K = ind.shape[1]
    N = B * K
    if N == 0:                                  # degenerate: no objects
        return jnp.float32(0.0)

    # Channel-major gather: no full NCHW->NHWC transpose of the feature map;
    # only the K requested spatial positions per image are read.  Stays fused
    # with the slab packing below under this jit.
    feat = output.reshape(B, C, H * W)
    pred = jnp.take_along_axis(feat, ind[:, None, :].astype(jnp.int32), axis=2)
    pred = jnp.transpose(pred, (1, 0, 2)).reshape(C, N).astype(jnp.float32)

    res = rotres.reshape(N, 2).astype(jnp.float32)
    tbin = rotbin.reshape(N, 2).astype(jnp.float32)   # values in {0.0, 1.0}
    m = mask.reshape(N).astype(jnp.float32)

    # One channel-major slab: lanes = columns (padded to tile), sublanes = the
    # 16 fields.  Row 15 is the lane-validity row (zero-padded columns drop out
    # of every sum automatically).
    slab = jnp.concatenate([
        pred,                                   # rows 0-7
        jnp.sin(res[:, 0])[None, :],            # 8
        jnp.cos(res[:, 0])[None, :],            # 9
        jnp.sin(res[:, 1])[None, :],            # 10
        jnp.cos(res[:, 1])[None, :],            # 11
        tbin[:, 0][None, :],                    # 12
        tbin[:, 1][None, :],                    # 13
        m[None, :],                             # 14
        jnp.ones((1, N), jnp.float32),          # 15 validity
    ], axis=0)                                  # (16, N)

    # Tile cap high enough that realistic CenterNet sizes are a single step
    # (64K lanes * 64 B/col * 2 buffers ~= 8 MiB, well inside scoped VMEM on
    # v5e/v6e/v7x).
    tile = min(_round_up(N, 128), 64 * 1024)
    n_pad = _round_up(N, tile)
    slab = jnp.pad(slab, ((0, 0), (0, n_pad - N)))
    num_tiles = n_pad // tile

    kernel = functools.partial(_rot_loss_kernel, inv_n=1.0 / N,
                               num_tiles=num_tiles)
    scratch = [pltpu.VMEM((8, tile), jnp.float32)] if num_tiles > 1 else []

    loss = pl.pallas_call(
        kernel,
        out_shape=jax.ShapeDtypeStruct((1, 1), jnp.float32),
        grid=(num_tiles,),
        in_specs=[pl.BlockSpec((16, tile), lambda i: (0, i))],
        out_specs=pl.BlockSpec((1, 1), lambda i: (0, 0)),
        scratch_shapes=scratch,
        compiler_params=pltpu.CompilerParams(
            dimension_semantics=("arbitrary",)),
        cost_estimate=pl.CostEstimate(
            flops=50 * n_pad, transcendentals=4 * n_pad,
            bytes_accessed=64 * n_pad + 4),
    )(slab)
    return loss[0, 0]


def _reference_loss(output, mask, ind, rotbin, rotres):
    """Pure-JAX re-implementation of compute_rot_loss (PyTorch semantics)."""
    B, C, H, W = output.shape
    K = ind.shape[1]
    feat = jnp.transpose(output, (0, 2, 3, 1)).reshape(B, H * W, C)
    pred = jnp.take_along_axis(feat, ind[..., None].astype(jnp.int32), axis=1)
    o = pred.reshape(-1, 8).astype(jnp.float32)
    tb = rotbin.reshape(-1, 2).astype(jnp.int32)
    tr = rotres.reshape(-1, 2).astype(jnp.float32)
    mk = mask.reshape(-1, 1).astype(jnp.float32)

    def ce(logits, tgt):
        lse = jax.scipy.special.logsumexp(logits, axis=1)
        picked = jnp.take_along_axis(logits, tgt[:, None], axis=1)[:, 0]
        return jnp.mean(lse - picked)

    def sl1(x, y):
        d = jnp.abs(x - y)
        return jnp.where(d < 1.0, 0.5 * d * d, d - 0.5)

    lb1 = ce(o[:, 0:2] * mk, tb[:, 0])
    lb2 = ce(o[:, 4:6] * mk, tb[:, 1])

    def res(sin_p, cos_p, ang, valid):
        vf = valid.astype(jnp.float32)
        cnt = jnp.sum(vf)
        s = jnp.sum((sl1(sin_p, jnp.sin(ang)) + sl1(cos_p, jnp.cos(ang))) * vf)
        return jnp.where(cnt > 0, s / jnp.maximum(cnt, 1.0), 0.0)

    lr = res(o[:, 2], o[:, 3], tr[:, 0], tb[:, 0] != 0) + \
         res(o[:, 6], o[:, 7], tr[:, 1], tb[:, 1] != 0)
    return lb1 + lb2 + lr


if __name__ == "__main__":
    key = jax.random.PRNGKey(0)
    k1, k2, k3, k4, k5 = jax.random.split(key, 5)

    B, C, H, W, K = 2, 8, 16, 16, 8
    output = jax.random.normal(k1, (B, C, H, W), dtype=jnp.float32)
    ind = jax.random.randint(k2, (B, K), 0, H * W, dtype=jnp.int32)
    mask = jax.random.bernoulli(k3, 0.7, (B, K)).astype(jnp.float32)
    rotbin = jax.random.randint(k4, (B, K, 2), 0, 2, dtype=jnp.int32)
    rotres = jax.random.uniform(k5, (B, K, 2), dtype=jnp.float32,
                                minval=-3.14, maxval=3.14)

    loss = jax.block_until_ready(bin_rot_loss(output, mask, ind, rotbin, rotres))
    ref = jax.block_until_ready(_reference_loss(output, mask, ind, rotbin, rotres))
    assert jnp.allclose(loss, ref, atol=1e-5, rtol=1e-5), (loss, ref)
    print("KERNEL_OK")
</pallas_src>

<mosaic_0001>
module attributes {stable_mosaic.version = 11 : i64} {
  func.func @_rot_loss_kernel(%arg0: i32, %arg1: memref<16x128xf32, #tpu.memory_space<vmem>>, %arg2: memref<1x1xf32, #tpu.memory_space<vmem>>) attributes {dimension_semantics = [#tpu.dimension_semantics<arbitrary>], iteration_bounds = array<i64: 1>, scalar_prefetch = 0 : i64, scratch_operands = 0 : i64, tpu.core_type = #tpu.core_type<tc>, window_params = [{transform_indices = @transform_0, window_bounds = array<i64: 16, 128>}, {pipeline_mode = #tpu.pipeline_mode<synchronous>, transform_indices = @transform_1, window_bounds = array<i64: 1, 1>}]} {
    %c0 = arith.constant 0 : index
    %c0_0 = arith.constant 0 : index
    %0 = vector.load %arg1[%c0, %c0_0] : memref<16x128xf32, #tpu.memory_space<vmem>>, vector<8x128xf32>
    %c8 = arith.constant 8 : index
    %c0_1 = arith.constant 0 : index
    %1 = vector.load %arg1[%c8, %c0_1] : memref<16x128xf32, #tpu.memory_space<vmem>>, vector<8x128xf32>
    %2 = vector.extract_strided_slice %1 {offsets = [0, 0], sizes = [1, 128], strides = [1, 1]} : vector<8x128xf32> to vector<1x128xf32>
    %3 = vector.extract_strided_slice %1 {offsets = [1, 0], sizes = [1, 128], strides = [1, 1]} : vector<8x128xf32> to vector<1x128xf32>
    %4 = vector.extract_strided_slice %1 {offsets = [2, 0], sizes = [1, 128], strides = [1, 1]} : vector<8x128xf32> to vector<1x128xf32>
    %5 = vector.extract_strided_slice %1 {offsets = [3, 0], sizes = [1, 128], strides = [1, 1]} : vector<8x128xf32> to vector<1x128xf32>
    %6 = vector.extract_strided_slice %1 {offsets = [4, 0], sizes = [1, 128], strides = [1, 1]} : vector<8x128xf32> to vector<1x128xf32>
    %7 = vector.extract_strided_slice %1 {offsets = [5, 0], sizes = [1, 128], strides = [1, 1]} : vector<8x128xf32> to vector<1x128xf32>
    %8 = vector.extract_strided_slice %1 {offsets = [6, 0], sizes = [1, 128], strides = [1, 1]} : vector<8x128xf32> to vector<1x128xf32>
    %9 = vector.extract_strided_slice %1 {offsets = [7, 0], sizes = [1, 128], strides = [1, 1]} : vector<8x128xf32> to vector<1x128xf32>
    %10 = vector.extract_strided_slice %0 {offsets = [0, 0], sizes = [1, 128], strides = [1, 1]} : vector<8x128xf32> to vector<1x128xf32>
    %11 = vector.extract_strided_slice %0 {offsets = [1, 0], sizes = [1, 128], strides = [1, 1]} : vector<8x128xf32> to vector<1x128xf32>
    %12 = arith.subf %11, %10 : vector<1x128xf32>
    %13 = arith.mulf %12, %8 : vector<1x128xf32>
    %cst = arith.constant 0.000000e+00 : f32
    %14 = vector.broadcast %cst : f32 to vector<1x128xf32>
    %15 = arith.cmpf oeq, %6, %14 : vector<1x128xf32>
    %cst_2 = arith.constant 0.000000e+00 : f32
    %16 = vector.broadcast %cst_2 : f32 to vector<1x128xf32>
    %17 = arith.subf %16, %13 : vector<1x128xf32>
    %18 = arith.select %15, %13, %17 : vector<1x128xi1>, vector<1x128xf32>
    %cst_3 = arith.constant 0.000000e+00 : f32
    %19 = vector.broadcast %cst_3 : f32 to vector<1x128xf32>
    %20 = arith.maximumf %18, %19 : vector<1x128xf32>
    %21 = math.absf %18 : vector<1x128xf32>
    %cst_4 = arith.constant 0.000000e+00 : f32
    %22 = vector.broadcast %cst_4 : f32 to vector<1x128xf32>
    %23 = arith.subf %22, %21 : vector<1x128xf32>
    %24 = math.exp %23 : vector<1x128xf32>
    %cst_5 = arith.constant 1.000000e+00 : f32
    %25 = vector.broadcast %cst_5 : f32 to vector<1x128xf32>
    %26 = arith.addf %25, %24 : vector<1x128xf32>
    %27 = math.log %26 : vector<1x128xf32>
    %28 = arith.addf %20, %27 : vector<1x128xf32>
    %29 = arith.mulf %28, %9 : vector<1x128xf32>
    %30 = vector.extract_strided_slice %0 {offsets = [4, 0], sizes = [1, 128], strides = [1, 1]} : vector<8x128xf32> to vector<1x128xf32>
    %31 = vector.extract_strided_slice %0 {offsets = [5, 0], sizes = [1, 128], strides = [1, 1]} : vector<8x128xf32> to vector<1x128xf32>
    %32 = arith.subf %31, %30 : vector<1x128xf32>
    %33 = arith.mulf %32, %8 : vector<1x128xf32>
    %cst_6 = arith.constant 0.000000e+00 : f32
    %34 = vector.broadcast %cst_6 : f32 to vector<1x128xf32>
    %35 = arith.cmpf oeq, %7, %34 : vector<1x128xf32>
    %cst_7 = arith.constant 0.000000e+00 : f32
    %36 = vector.broadcast %cst_7 : f32 to vector<1x128xf32>
    %37 = arith.subf %36, %33 : vector<1x128xf32>
    %38 = arith.select %35, %33, %37 : vector<1x128xi1>, vector<1x128xf32>
    %cst_8 = arith.constant 0.000000e+00 : f32
    %39 = vector.broadcast %cst_8 : f32 to vector<1x128xf32>
    %40 = arith.maximumf %38, %39 : vector<1x128xf32>
    %41 = math.absf %38 : vector<1x128xf32>
    %cst_9 = arith.constant 0.000000e+00 : f32
    %42 = vector.broadcast %cst_9 : f32 to vector<1x128xf32>
    %43 = arith.subf %42, %41 : vector<1x128xf32>
    %44 = math.exp %43 : vector<1x128xf32>
    %cst_10 = arith.constant 1.000000e+00 : f32
    %45 = vector.broadcast %cst_10 : f32 to vector<1x128xf32>
    %46 = arith.addf %45, %44 : vector<1x128xf32>
    %47 = math.log %46 : vector<1x128xf32>
    %48 = arith.addf %40, %47 : vector<1x128xf32>
    %49 = arith.mulf %48, %9 : vector<1x128xf32>
    %50 = arith.addf %29, %49 : vector<1x128xf32>
    %51 = vector.extract_strided_slice %0 {offsets = [2, 0], sizes = [1, 128], strides = [1, 1]} : vector<8x128xf32> to vector<1x128xf32>
    %52 = vector.extract_strided_slice %0 {offsets = [3, 0], sizes = [1, 128], strides = [1, 1]} : vector<8x128xf32> to vector<1x128xf32>
    %cst_11 = arith.constant 0.000000e+00 : f32
    %53 = vector.broadcast %cst_11 : f32 to vector<1x128xf32>
    %54 = arith.cmpf one, %6, %53 : vector<1x128xf32>
    %cst_12 = arith.constant 0.000000e+00 : f32
    %55 = vector.broadcast %cst_12 : f32 to vector<1x128xf32>
    %56 = arith.select %54, %9, %55 : vector<1x128xi1>, vector<1x128xf32>
    %57 = arith.subf %51, %2 : vector<1x128xf32>
    %58 = math.absf %57 : vector<1x128xf32>
    %cst_13 = arith.constant 1.000000e+00 : f32
    %59 = vector.broadcast %cst_13 : f32 to vector<1x128xf32>
    %60 = arith.cmpf olt, %58, %59 : vector<1x128xf32>
    %cst_14 = arith.constant 5.000000e-01 : f32
    %61 = vector.broadcast %cst_14 : f32 to vector<1x128xf32>
    %62 = arith.mulf %61, %58 : vector<1x128xf32>
    %63 = arith.mulf %62, %58 : vector<1x128xf32>
    %cst_15 = arith.constant 5.000000e-01 : f32
    %64 = vector.broadcast %cst_15 : f32 to vector<1x128xf32>
    %65 = arith.subf %58, %64 : vector<1x128xf32>
    %66 = arith.select %60, %63, %65 : vector<1x128xi1>, vector<1x128xf32>
    %67 = arith.subf %52, %3 : vector<1x128xf32>
    %68 = math.absf %67 : vector<1x128xf32>
    %cst_16 = arith.constant 1.000000e+00 : f32
    %69 = vector.broadcast %cst_16 : f32 to vector<1x128xf32>
    %70 = arith.cmpf olt, %68, %69 : vector<1x128xf32>
    %cst_17 = arith.constant 5.000000e-01 : f32
    %71 = vector.broadcast %cst_17 : f32 to vector<1x128xf32>
    %72 = arith.mulf %71, %68 : vector<1x128xf32>
    %73 = arith.mulf %72, %68 : vector<1x128xf32>
    %cst_18 = arith.constant 5.000000e-01 : f32
    %74 = vector.broadcast %cst_18 : f32 to vector<1x128xf32>
    %75 = arith.subf %68, %74 : vector<1x128xf32>
    %76 = arith.select %70, %73, %75 : vector<1x128xi1>, vector<1x128xf32>
    %77 = arith.addf %66, %76 : vector<1x128xf32>
    %78 = arith.mulf %77, %56 : vector<1x128xf32>
    %79 = vector.extract_strided_slice %0 {offsets = [6, 0], sizes = [1, 128], strides = [1, 1]} : vector<8x128xf32> to vector<1x128xf32>
    %80 = vector.extract_strided_slice %0 {offsets = [7, 0], sizes = [1, 128], strides = [1, 1]} : vector<8x128xf32> to vector<1x128xf32>
    %cst_19 = arith.constant 0.000000e+00 : f32
    %81 = vector.broadcast %cst_19 : f32 to vector<1x128xf32>
    %82 = arith.cmpf one, %7, %81 : vector<1x128xf32>
    %cst_20 = arith.constant 0.000000e+00 : f32
    %83 = vector.broadcast %cst_20 : f32 to vector<1x128xf32>
    %84 = arith.select %82, %9, %83 : vector<1x128xi1>, vector<1x128xf32>
    %85 = arith.subf %79, %4 : vector<1x128xf32>
    %86 = math.absf %85 : vector<1x128xf32>
    %cst_21 = arith.constant 1.000000e+00 : f32
    %87 = vector.broadcast %cst_21 : f32 to vector<1x128xf32>
    %88 = arith.cmpf olt, %86, %87 : vector<1x128xf32>
    %cst_22 = arith.constant 5.000000e-01 : f32
    %89 = vector.broadcast %cst_22 : f32 to vector<1x128xf32>
    %90 = arith.mulf %89, %86 : vector<1x128xf32>
    %91 = arith.mulf %90, %86 : vector<1x128xf32>
    %cst_23 = arith.constant 5.000000e-01 : f32
    %92 = vector.broadcast %cst_23 : f32 to vector<1x128xf32>
    %93 = arith.subf %86, %92 : vector<1x128xf32>
    %94 = arith.select %88, %91, %93 : vector<1x128xi1>, vector<1x128xf32>
    %95 = arith.subf %80, %5 : vector<1x128xf32>
    %96 = math.absf %95 : vector<1x128xf32>
    %cst_24 = arith.constant 1.000000e+00 : f32
    %97 = vector.broadcast %cst_24 : f32 to vector<1x128xf32>
    %98 = arith.cmpf olt, %96, %97 : vector<1x128xf32>
    %cst_25 = arith.constant 5.000000e-01 : f32
    %99 = vector.broadcast %cst_25 : f32 to vector<1x128xf32>
    %100 = arith.mulf %99, %96 : vector<1x128xf32>
    %101 = arith.mulf %100, %96 : vector<1x128xf32>
    %cst_26 = arith.constant 5.000000e-01 : f32
    %102 = vector.broadcast %cst_26 : f32 to vector<1x128xf32>
    %103 = arith.subf %96, %102 : vector<1x128xf32>
    %104 = arith.select %98, %101, %103 : vector<1x128xi1>, vector<1x128xf32>
    %105 = arith.addf %94, %104 : vector<1x128xf32>
    %106 = arith.mulf %105, %84 : vector<1x128xf32>
    %cst_27 = arith.constant dense<0.000000e+00> : vector<1xf32>
    %107 = vector.multi_reduction <add>, %50, %cst_27 [1] : vector<1x128xf32> to vector<1xf32>
    %108 = vector.shape_cast %107 : vector<1xf32> to vector<1x1xf32>
    %cst_28 = arith.constant dense<0.000000e+00> : vector<1xf32>
    %109 = vector.multi_reduction <add>, %78, %cst_28 [1] : vector<1x128xf32> to vector<1xf32>
    %110 = vector.shape_cast %109 : vector<1xf32> to vector<1x1xf32>
    %cst_29 = arith.constant dense<0.000000e+00> : vector<1xf32>
    %111 = vector.multi_reduction <add>, %56, %cst_29 [1] : vector<1x128xf32> to vector<1xf32>
    %112 = vector.shape_cast %111 : vector<1xf32> to vector<1x1xf32>
    %cst_30 = arith.constant dense<0.000000e+00> : vector<1xf32>
    %113 = vector.multi_reduction <add>, %106, %cst_30 [1] : vector<1x128xf32> to vector<1xf32>
    %114 = vector.shape_cast %113 : vector<1xf32> to vector<1x1xf32>
    %cst_31 = arith.constant dense<0.000000e+00> : vector<1xf32>
    %115 = vector.multi_reduction <add>, %84, %cst_31 [1] : vector<1x128xf32> to vector<1xf32>
    %116 = vector.shape_cast %115 : vector<1xf32> to vector<1x1xf32>
    %cst_32 = arith.constant 6.250000e-02 : f32
    %117 = vector.broadcast %cst_32 : f32 to vector<1x1xf32>
    %118 = arith.mulf %108, %117 : vector<1x1xf32>
    %cst_33 = arith.constant 0.000000e+00 : f32
    %119 = vector.broadcast %cst_33 : f32 to vector<1x1xf32>
    %120 = arith.cmpf ogt, %112, %119 : vector<1x1xf32>
    %cst_34 = arith.constant 1.000000e+00 : f32
    %121 = vector.broadcast %cst_34 : f32 to vector<1x1xf32>
    %122 = arith.maximumf %112, %121 : vector<1x1xf32>
    %123 = arith.divf %110, %122 : vector<1x1xf32>
    %cst_35 = arith.constant 0.000000e+00 : f32
    %124 = vector.broadcast %cst_35 : f32 to vector<1x1xf32>
    %125 = arith.select %120, %123, %124 : vector<1x1xi1>, vector<1x1xf32>
    %126 = arith.addf %118, %125 : vector<1x1xf32>
    %cst_36 = arith.constant 0.000000e+00 : f32
    %127 = vector.broadcast %cst_36 : f32 to vector<1x1xf32>
    %128 = arith.cmpf ogt, %116, %127 : vector<1x1xf32>
    %cst_37 = arith.constant 1.000000e+00 : f32
    %129 = vector.broadcast %cst_37 : f32 to vector<1x1xf32>
    %130 = arith.maximumf %116, %129 : vector<1x1xf32>
    %131 = arith.divf %114, %130 : vector<1x1xf32>
    %cst_38 = arith.constant 0.000000e+00 : f32
    %132 = vector.broadcast %cst_38 : f32 to vector<1x1xf32>
    %133 = arith.select %128, %131, %132 : vector<1x1xi1>, vector<1x1xf32>
    %134 = arith.addf %126, %133 : vector<1x1xf32>
    %c0_39 = arith.constant 0 : index
    %c0_40 = arith.constant 0 : index
    %135 = vector.load %arg2[%c0_39, %c0_40] : memref<1x1xf32, #tpu.memory_space<vmem>>, vector<1x1xf32>
    tpu.vector_store %arg2[%c0_39, %c0_40], %134 {strides = array<i32>} : memref<1x1xf32, #tpu.memory_space<vmem>>, vector<1x1xf32>,
    return
  }
  func.func @transform_0(%arg0: i32) -> (i32, i32) {
    %c0_i32 = arith.constant 0 : i32
    %c0_i32_0 = arith.constant 0 : i32
    return %c0_i32, %arg0 : i32, i32
  }
  func.func @transform_1(%arg0: i32) -> (i32, i32) {
    %c0_i32 = arith.constant 0 : i32
    %c0_i32_0 = arith.constant 0 : i32
    %c0_i32_1 = arith.constant 0 : i32
    return %c0_i32, %c0_i32_0 : i32, i32
  }
}

</mosaic_0001>

<bundles_post_ra>
// kernel: bin_rot_loss.1
= control target key start
LH: loop header
LB: loop body
LE: loop exit
PB: predicated region body
PF: predicated region fallthrough
CT: control target
= control target key end

     0   :  { %vm98_vm1 = vcmask 1044484   ;;  %s278_s0 = inlined_call_operand.vmem [shape: f32[16,128], index: 0, kind: input, shape index: {}]   ;;  %s279_s1 = inlined_call_operand.hbm [shape: f32[1,1], index: 1, kind: output, shape index: {}]  }
   0x1   :  { %v244_v0 = vld [vmem:[%s278_s0 + $0x8] sm:$0xff]  ;;  %v9_v1 = vld [vmem:[%s278_s0] sm:$0xff] }
   0x2   :  { %v37_v2 = vrot.slane %v244_v0, 3  ;;  %vm61_vm0 = vcmp.ne.f32.partialorder %v244_v0, 0.0  ;;  %v63_v3 = vrot.slane %v244_v0, 6 }
   0x3   :  { %6 = vsyncpa [#allocation3], 0  ;;  %v54_v4 = vrot.slane %v244_v0, 2  ;;  %v81_v5 = vrot.slane %v244_v0, 4  ;;  %v12_v6 = vrot.slane %v9_v1, 7  ;;  %v16_v10 = vrot.slane %v244_v0, 5 }
   0x4   :  { %v62_v7 = vsel %vm61_vm0, %v37_v2, 0.0  ;;  %v65_v8 = vsub.f32 %v9_v1, %v63_v3  ;;  %v40_v11 = vrot.slane %v244_v0, 1  ;;  %vm113_vm2 = vcmask 1045509   ;;  %s230_s0 = smov [#allocation2]   ;;  %s180_s13 = sshll.u32 %s279_s1, 4  ;;  %s181_s13 = int_to_ptr.hbm [resolvable:$true] %s180_s13 }
   0x5   :  { %v106_v9 = vsel %vm98_vm1, %v62_v7, 0.0  ;;  %v83_v13 = vsub.f32 %v9_v1, %v81_v5  ;;  %v14_v14 = vsub.f32 %v9_v1, %v12_v6  ;;  %v80_v15 = vsel %vm61_vm0, %v54_v4, 0.0  ;;  %s178_s10 = sshll.u32 %s230_s0, 4  ;;  %s179_s10 = int_to_ptr.vmem [resolvable:$true] %s178_s10 }
   0x6   :  { %107 = vadd.xlane.f32.xlu0 %v106_v9  ;;  %v66_v12 = vand.u32 2147483647, %v65_v8  ;;  %vm19_vm4 = vcmp.eq.f32.partialorder %v244_v0, 0.0  ;;  %v114_v21 = vsel %vm113_vm2, %v80_v15, 0.0  ;;  %v77_v30 = vrot.slane %v62_v7, 2 }
   0x7   :  { %v84_v18 = vand.u32 2147483647, %v83_v13  ;;  %v18_v19 = vmul.f32 %v16_v10, %v14_v14  ;;  %v42_v20 = vmul.f32 %v40_v11, %v14_v14  ;;  %vm102_vm6 = vcmask 1042434  }
   0x8   :  { %v68_v16 = vmul.f32 0.5, %v66_v12  ;;  %v189_v17 = vadd.f32 -0.5, %v66_v12  ;;  %vm67_vm3 = vcmp.lt.f32.partialorder %v66_v12, 1.0  ;;  %v95_v41 = vrot.slane %v80_v15, 7 }
   0x9   :  { %v86_v23 = vmul.f32 0.5, %v84_v18  ;;  %v190_v24 = vadd.f32 -0.5, %v84_v18  ;;  %vm85_vm5 = vcmp.lt.f32.partialorder %v84_v18, 1.0  ;;  %v20_v25 = vsub.f32 0.0, %v18_v19 }
   0xa   :  { %v69_v22 = vmul.f32 %v68_v16, %v66_v12  ;;  %v22_v26 = vrot.slane %v18_v19, 5  ;;  %v43_v27 = vsub.f32 0.0, %v42_v20  ;;  %vm109_vm7 = vcmask 1046534  }
   0xb   :  { %v87_v29 = vmul.f32 %v86_v23, %v84_v18  ;;  %v25_v32 = vrot.slane %v20_v25, 5  ;;  %vm171_vm2 = vcmask 4100  }
   0xc   :  { %v71_v28 = vsel %vm67_vm3, %v69_v22, %v189_v17  ;;  %v44_v33 = vsel %vm19_vm4, %v42_v20, %v43_v27 }
   0xd   :  { %v73_v31 = vrot.slane %v71_v28, 1  ;;  %v89_v34 = vsel %vm85_vm5, %v87_v29, %v190_v24  ;;  %v46_v35 = vand.u32 2147483647, %v44_v33  ;;  %v27_v38 = vsel %vm19_vm4, %v22_v26, %v25_v32 }
   0xe   :  { %115 = vadd.xlane.f32.xlu0 %v114_v21  ;;  %v91_v37 = vrot.slane %v89_v34, 1  ;;  %v29_v39 = vand.u32 2147483647, %v27_v38  ;;  %v45_v54 = vmax.f32 %v44_v33, 0.0  ;;  %v28_v56 = vmax.f32 %v27_v38, 0.0 }
   0xf   :  { %v75_v36 = vadd.f32 %v73_v31, %v71_v28  ;;  %v47_v40 = vsub.f32 0.0, %v46_v35 }
  0x10   :  { %v93_v43 = vadd.f32 %v91_v37, %v89_v34  ;;  %v30_v44 = vsub.f32 0.0, %v29_v39 }
  0x11   :  { %v79_v42 = vmul.f32 %v77_v30, %v75_v36  ;;  %v48_v45 = vmul.f32 1.442695, %v47_v40 }
  0x12   :  { %v31_v47 = vmul.f32 1.442695, %v30_v44  ;;  %v97_v48 = vmul.f32 %v95_v41, %v93_v43 }
  0x13   :  { %v103_v46 = vsel %vm102_vm6, %v79_v42, 0.0  ;;  %192 = vpow2.f32 %v48_v45 }
  0x14   :  { %104 = vadd.xlane.f32.xlu1 %v103_v46  ;;  %194 = vpow2.f32 %v31_v47  ;;  %v110_v49 = vsel %vm109_vm7, %v97_v48, 0.0 }
  0x19   :  { %v193_v50 = vpop.eup %192 }
  0x1a   :  { %v50_v51 = vadd.f32 1.0, %v193_v50  ;;  %v195_v52 = vpop.eup %194 }
  0x1b   :  { %v33_v53 = vadd.f32 1.0, %v195_v52 }
  0x1c   :  { %111 = vadd.xlane.f32.xlu1 %v110_v49  ;;  %196 = vlog2.f32 %v50_v51 }
  0x1d   :  { %198 = vlog2.f32 %v33_v53 }
  0x22   :  { %v197_v55 = vpop.eup %196 }
  0x23   :  { %v52_v57 = vmul.f32 0.6931472, %v197_v55  ;;  %v199_v58 = vpop.eup %198 }
  0x24   :  { %v35_v59 = vmul.f32 0.6931472, %v199_v58 }
  0x25   :  { %v53_v60 = vadd.f32 %v52_v57, %v45_v54 }
  0x26   :  { %v36_v61 = vadd.f32 %v35_v59, %v28_v56 }
  0x27   :  { %v56_v62 = vmul.f32 %v54_v4, %v53_v60 }
  0x28   :  { %v39_v63 = vmul.f32 %v37_v2, %v36_v61 }
  0x29   :  { %v58_v1 = vrot.slane %v56_v62, 1 }
  0x2b   :  { %v60_v3 = vadd.f32 %v58_v1, %v39_v63 }
  0x2d   :  { %v99_v5 = vsel %vm98_vm1, %v60_v3, 0.0 }
  0x2e   :  { %100 = vadd.xlane.f32.xlu2 %v99_v5 }
  0x79   :  { %v108_v6 = vpop.xlane.xlu0 %107 }
  0x7a   :  { %v119_v7 = vmax.f32 %v108_v6, 1.0  ;;  %vm118_vm1 = vcmp.gt.f32.partialorder %v108_v6, 0.0 }
  0x7c   :  { %v121_v8 = vrot.slane %v119_v7, 2 }
  0x7e   :  { %200 = vrcp.f32 %v121_v8  ;;  %vm128_vm10 = vweird.f32 %v121_v8  ;;  %v134_v21 = vand.u32 2147483648, %v121_v8  ;;  %v132_v23 = vand.u32 2147483647, %v121_v8 }
  0x80   :  { %v135_v27 = vor.u32 1.1754944e-38, %v134_v21  ;;  %vm133_vm15 = vcmp.eq.f32.partialorder %v132_v23, 8.507059e+37 }
  0x81   :  { %v116_v9 = vpop.xlane.xlu0 %115 }
  0x82   :  { %v144_v10 = vmax.f32 %v116_v9, 1.0  ;;  %vm143_vm0 = vcmp.gt.f32.partialorder %v116_v9, 0.0 }
  0x84   :  { %v201_v11 = vpop.eup %200  ;;  %v146_v12 = vrot.slane %v144_v10, 7 }
  0x85   :  { %v124_v13 = vmul.f32 %v201_v11, %v121_v8  ;;  %vm129_vm11 = vweird.f32 %v201_v11 }
  0x86   :  { %202 = vrcp.f32 %v146_v12  ;;  %vm153_vm8 = vweird.f32 %v146_v12  ;;  %v159_v18 = vand.u32 2147483648, %v146_v12  ;;  %v157_v20 = vand.u32 2147483647, %v146_v12  ;;  %vm130_vm13 = vmor %vm128_vm10, %vm129_vm11 }
  0x87   :  { %v125_v14 = vsub.f32 1.0, %v124_v13  ;;  %v105_v15 = vpop.xlane.xlu1 %104 }
  0x88   :  { %v160_v25 = vor.u32 1.1754944e-38, %v159_v18  ;;  %vm158_vm14 = vcmp.eq.f32.partialorder %v157_v20, 8.507059e+37 }
  0x89   :  { %v126_v2 = vmul.f32 %v201_v11, %v125_v14 }
  0x8b   :  { %v127_v19 = vadd.f32 %v201_v11, %v126_v2 }
  0x8c   :  { %v203_v4 = vpop.eup %202 }
  0x8d   :  { %v149_v0 = vmul.f32 %v203_v4, %v146_v12  ;;  %vm154_vm9 = vweird.f32 %v203_v4  ;;  %v131_v26 = vsel %vm130_vm13, %v201_v11, %v127_v19 }
  0x8e   :  { %vm155_vm12 = vmor %vm153_vm8, %vm154_vm9  ;;  %v136_v30 = vsel %vm133_vm15, %v135_v27, %v131_v26 }
  0x8f   :  { %v150_v16 = vsub.f32 1.0, %v149_v0  ;;  %v112_v29 = vpop.xlane.xlu1 %111  ;;  %v137_v32 = vmul.f32 %v136_v30, %v105_v15 }
  0x91   :  { %v151_v17 = vmul.f32 %v203_v4, %v150_v16  ;;  %v139_v34 = vrot.slane %v137_v32, 6 }
  0x93   :  { %v152_v22 = vadd.f32 %v203_v4, %v151_v17  ;;  %v141_v38 = vsel %vm118_vm1, %v139_v34, 0.0 }
  0x95   :  { %v156_v24 = vsel %vm155_vm12, %v203_v4, %v152_v22 }
  0x96   :  { %v161_v28 = vsel %vm158_vm14, %v160_v25, %v156_v24 }
  0x97   :  { %v162_v31 = vmul.f32 %v161_v28, %v112_v29 }
  0x99   :  { %v164_v33 = vrot.slane %v162_v31, 1 }
  0x9b   :  { %v166_v35 = vsel %vm143_vm0, %v164_v33, 0.0 }
  0x9c   :  { %v168_v39 = vrot.slane %v166_v35, 1 }
  0xa1   :  { %v101_v36 = vpop.xlane.xlu2 %100 }
  0xa2   :  { %v117_v37 = vmul.f32 0.0625, %v101_v36 }
  0xa4   :  { %v142_v40 = vadd.f32 %v141_v38, %v117_v37 }
  0xa6   :  { %v170_v41 = vadd.f32 %v168_v39, %v142_v40 }
  0xa8   :  { %172 = vst.msk [vmem:[#allocation2 - $0x4] sm:$0x10] %vm171_vm2, %v170_v41 }
  0xa9   :  { %183 = dma.vmem_to_hbm [thread:$0]  %s179_s10, 16, %s181_s13, [#allocation3]  }
  0xaa   :  { %228 = dma.done.wait [#allocation3], 16  }
  0xab   :  { %229 = vsyncadd [#allocation3], 4294967280 }
  0xac   :  { %188 = vsyncpa [#allocation3], 1 }

</bundles_post_ra>
